<compile_context>
chip_gen: v5e
topology: v5e:2x2
jax: 0.10.0
libtpu: 0.0.40
codegen_flags: <defaults>
</compile_context>

<pallas_src>
import jax
import jax.numpy as jnp
from jax import lax
from jax.experimental import pallas as pl
from jax.experimental.pallas import tpu as pltpu


def _ensemble_kernel(flag_ref, counts_ref, tab_ref, w_ref, b_ref, onehot_ref,
                     probs_ref, loss_ref):
    m = pl.program_id(1)
    n_models = pl.num_programs(1)

    @pl.when(m == 0)
    def _init():
        probs_ref[...] = jnp.zeros_like(probs_ref)
        loss_ref[...] = jnp.zeros_like(loss_ref)

    counts = counts_ref[...]                           # (TB, V)  f32 pooling weights
    table = tab_ref[0].astype(jnp.float32)             # (V, H)   bf16 in HBM -> f32
    head = w_ref[0].astype(jnp.float32)                # (H, Lp)  bf16 in HBM -> f32
    bias = b_ref[0]                                    # (1, Lp)  f32, pads = -1e30

    # Fused embedding-gather + masked mean pooling, then classifier head (MXU).
    pooled = jnp.dot(counts, table, preferred_element_type=jnp.float32)       # (TB, H)
    logits = jnp.dot(pooled, head, preferred_element_type=jnp.float32) + bias  # (TB, Lp)

    # Softmax over the lane-dense label axis (padded lanes have logit -1e30).
    mx = jnp.max(logits, axis=1, keepdims=True)        # (TB, 1)
    e = jnp.exp(logits - mx)                           # padded lanes -> 0
    denom = jnp.sum(e, axis=1, keepdims=True)          # (TB, 1)
    probs_ref[...] += e / denom                        # mean-prob accumulator

    @pl.when(m == n_models - 1)
    def _finalize():
        probs_ref[...] *= 1.0 / n_models

    # Per-member cross-entropy, computed without materializing logp.
    @pl.when(flag_ref[0] == 1)
    def _loss():
        oh = onehot_ref[...]                            # (TB, Lp) one_hot/B, pad rows = 0
        dot = jnp.sum(oh * logits)                      # sum_b logits[b, y_b] / B
        rowmass = jnp.sum(oh, axis=1, keepdims=True)    # 1/B for labelled rows, else 0
        corr = jnp.sum(rowmass * (mx + jnp.log(denom)))
        lane = lax.broadcasted_iota(jnp.int32, loss_ref.shape, 2)
        loss_ref[...] += jnp.where(lane == m, corr - dot, 0.0)


def _vmem_limit_bytes(TB, V, H, Lp):
    """Derive a per-generation-safe VMEM budget from the actual block sizes."""
    bf2, f4 = 2, 4
    per_member = V * H * bf2 + H * Lp * bf2 + Lp * f4          # streamed per m
    per_tile = TB * V * f4 + TB * Lp * f4                      # counts + onehot
    outputs = TB * Lp * f4 + 8 * 128 * f4                      # resident accumulators
    need = 2 * (per_member + per_tile) + outputs               # 2x for double buffering
    return int(min(max(2 * need + (1 << 20), 4 << 20), 48 << 20))


def ensemble_pallas(has_labels, counts, tables, w_pad, b_pad, onehot, *, TB, nB):
    """counts: (B_pad,V) f32, tables: (M,V,H) bf16, w_pad: (M,H,Lp) bf16,
    b_pad: (M,1,Lp) f32, onehot: (B_pad,Lp) f32, has_labels: (1,) i32."""
    M, V, H = tables.shape
    B_pad = counts.shape[0]
    Lp = w_pad.shape[-1]

    grid_spec = pltpu.PrefetchScalarGridSpec(
        num_scalar_prefetch=1,
        grid=(nB, M),                                   # batch tiles (parallel), members (arbitrary)
        in_specs=[
            pl.BlockSpec((TB, V), lambda bi, m, flag: (bi, 0)),       # pooling weights
            pl.BlockSpec((1, V, H), lambda bi, m, flag: (m, 0, 0)),   # per-member table
            pl.BlockSpec((1, H, Lp), lambda bi, m, flag: (m, 0, 0)),  # per-member head
            pl.BlockSpec((1, 1, Lp), lambda bi, m, flag: (m, 0, 0)),  # per-member bias
            pl.BlockSpec((TB, Lp), lambda bi, m, flag: (bi, 0)),      # scaled one-hot labels
        ],
        out_specs=[
            pl.BlockSpec((TB, Lp), lambda bi, m, flag: (bi, 0)),      # class_probs (resident)
            pl.BlockSpec((1, 8, 128), lambda bi, m, flag: (bi, 0, 0)),  # loss partials (resident)
        ],
    )
    probs_pad, loss_parts = pl.pallas_call(
        _ensemble_kernel,
        grid_spec=grid_spec,
        out_shape=(
            jax.ShapeDtypeStruct((B_pad, Lp), jnp.float32),
            jax.ShapeDtypeStruct((nB, 8, 128), jnp.float32),
        ),
        compiler_params=pltpu.CompilerParams(
            dimension_semantics=("parallel", "arbitrary"),
            vmem_limit_bytes=_vmem_limit_bytes(TB, V, H, Lp)),
    )(has_labels, counts, tables, w_pad, b_pad, onehot)
    return probs_pad, loss_parts


def ensemble_forward(params, input_ids, attention_mask=None, labels=None):
    """Mirrors HuggingFaceClassifierEnsemble.forward."""
    emb_tables, w, b = params                      # (M,V,H), (M,H,L), (M,L)
    M, V, H = emb_tables.shape
    L = w.shape[-1]
    B, S = input_ids.shape
    Lp = ((L + 127) // 128) * 128                  # lane-dense label axis

    if attention_mask is None:
        attention_mask = jnp.ones((B, S), dtype=jnp.int32)
    mask_f = attention_mask.astype(jnp.float32)
    mask_w = mask_f / jnp.maximum(mask_f.sum(-1, keepdims=True), 1.0)     # (B, S)

    # Sublane-dense batch padding / tiling (TB rows per grid step).
    B8 = ((B + 7) // 8) * 8
    TB = min(B8, 256)
    B_pad = ((B8 + TB - 1) // TB) * TB
    nB = B_pad // TB

    # counts[b,v] = sum_s mask_w[b,s] * [input_ids[b,s]==v]  (scatter-add; no
    # (B,S,V) one-hot materialized).  Padded rows stay zero.
    rows = jnp.arange(B, dtype=jnp.int32)[:, None]
    counts = jnp.zeros((B_pad, V), jnp.float32).at[rows, input_ids].add(mask_w)

    # bf16 weights in HBM (halves table traffic); padded bias = -1e30 so the
    # softmax assigns exactly zero probability to padding lanes.
    tables_bf16 = emb_tables.astype(jnp.bfloat16)
    w_pad = jnp.pad(w, ((0, 0), (0, 0), (0, Lp - L))).astype(jnp.bfloat16)
    b_pad = jnp.pad(b, ((0, 0), (0, Lp - L)),
                    constant_values=-1e30).reshape(M, 1, Lp).astype(jnp.float32)

    if labels is not None:
        onehot = jax.nn.one_hot(labels, Lp, dtype=jnp.float32) * (1.0 / B)
        onehot = jnp.pad(onehot, ((0, B_pad - B), (0, 0)))
        has_labels = jnp.array([1], dtype=jnp.int32)
    else:
        onehot = jnp.zeros((B_pad, Lp), dtype=jnp.float32)
        has_labels = jnp.array([0], dtype=jnp.int32)

    probs_pad, loss_parts = ensemble_pallas(
        has_labels, counts, tables_bf16, w_pad, b_pad, onehot, TB=TB, nB=nB)

    class_probs = probs_pad[:B, :L]
    loss = loss_parts[:, 0, :M].sum(axis=0) if labels is not None else None
    return class_probs, loss


def ensemble_reference(params, input_ids, attention_mask, labels):
    """Pure-JAX reference implementation (for validation)."""
    emb_tables, w, b = params
    L = w.shape[-1]
    mask_f = attention_mask.astype(jnp.float32)
    emb = jnp.take(emb_tables, input_ids, axis=1)                        # (M,B,S,H)
    msum = jnp.maximum(mask_f.sum(-1, keepdims=True), 1.0)               # (B,1)
    pooled = (emb * mask_f[None, :, :, None]).sum(2) / msum[None]        # (M,B,H)
    logits = jnp.einsum('mbh,mhl->mbl', pooled, w) + b[:, None, :]       # (M,B,L)
    probs = jax.nn.softmax(logits, axis=-1)
    class_probs = probs.mean(0)
    onehot = jax.nn.one_hot(labels, L, dtype=jnp.float32)
    logp = jax.nn.log_softmax(logits, axis=-1)
    loss = -(onehot[None] * logp).sum(-1).mean(-1)                       # (M,)
    return class_probs, loss


if __name__ == "__main__":
    # small shapes consistent with the module's forward
    M = 3        # num_models
    B = 4        # batch_size
    S = 8        # sequence length
    H = 32       # hidden size of each synthetic classifier
    L = 4        # num_labels
    V = 64       # vocab size

    key = jax.random.PRNGKey(0)
    k_emb, k_w, k_b, k_ids, k_lab = jax.random.split(key, 5)

    # Deterministic synthetic parameters.  Weights are pre-rounded to
    # bf16-representable values so the kernel's bf16 HBM storage is bit-exact
    # against the f32 reference.
    emb_tables = (jax.random.normal(k_emb, (M, V, H), dtype=jnp.float32) * 0.1
                  ).astype(jnp.bfloat16).astype(jnp.float32)
    w = (jax.random.normal(k_w, (M, H, L), dtype=jnp.float32) * 0.1
         ).astype(jnp.bfloat16).astype(jnp.float32)
    b = jax.random.normal(k_b, (M, L), dtype=jnp.float32) * 0.1
    params = (emb_tables, w, b)

    input_ids = jax.random.randint(k_ids, (B, S), 0, V, dtype=jnp.int32)
    attention_mask = jnp.array(
        [[1] * S, [1] * (S - 2) + [0, 0], [1] * (S - 3) + [0] * 3, [1] * S],
        dtype=jnp.int32)
    labels = jax.random.randint(k_lab, (B,), 0, L, dtype=jnp.int32)

    class_probs, loss = ensemble_forward(params, input_ids, attention_mask, labels)
    jax.block_until_ready((class_probs, loss))

    ref_probs, ref_loss = ensemble_reference(params, input_ids, attention_mask, labels)
    assert class_probs.shape == (B, L)
    assert loss.shape == (M,)
    assert jnp.allclose(class_probs, ref_probs, atol=1e-4, rtol=1e-4)
    assert jnp.allclose(loss, ref_loss, atol=1e-4, rtol=1e-4)

    # labels=None path: loss branch is gated off, probs unchanged.
    probs_nolab, loss_nolab = ensemble_forward(params, input_ids, attention_mask, None)
    jax.block_until_ready(probs_nolab)
    assert loss_nolab is None
    assert jnp.allclose(probs_nolab, ref_probs, atol=1e-4, rtol=1e-4)

    print("KERNEL_OK")
</pallas_src>

<mosaic_0001>
module attributes {stable_mosaic.version = 11 : i64} {
  func.func @_ensemble_kernel(%arg0: i32, %arg1: i32, %arg2: memref<1xi32, #tpu.memory_space<smem>>, %arg3: memref<8x64xf32, #tpu.memory_space<vmem>>, %arg4: memref<1x64x32xbf16, #tpu.memory_space<vmem>>, %arg5: memref<1x32x128xbf16, #tpu.memory_space<vmem>>, %arg6: memref<1x1x128xf32, #tpu.memory_space<vmem>>, %arg7: memref<8x128xf32, #tpu.memory_space<vmem>>, %arg8: memref<8x128xf32, #tpu.memory_space<vmem>>, %arg9: memref<1x8x128xf32, #tpu.memory_space<vmem>>) attributes {dimension_semantics = [#tpu.dimension_semantics<parallel>, #tpu.dimension_semantics<arbitrary>], iteration_bounds = array<i64: 1, 3>, scalar_prefetch = 1 : i64, scratch_operands = 0 : i64, tpu.core_type = #tpu.core_type<tc>, window_params = [{transform_indices = @transform_0, window_bounds = array<i64: 8, 64>}, {transform_indices = @transform_1, window_bounds = array<i64: 1, 64, 32>}, {transform_indices = @transform_2, window_bounds = array<i64: 1, 32, 128>}, {transform_indices = @transform_3, window_bounds = array<i64: 1, 1, 128>}, {transform_indices = @transform_4, window_bounds = array<i64: 8, 128>}, {transform_indices = @transform_5, window_bounds = array<i64: 8, 128>}, {transform_indices = @transform_6, window_bounds = array<i64: 1, 8, 128>}]} {
    %c0_i32 = arith.constant 0 : i32
    %0 = arith.cmpi eq, %arg1, %c0_i32 : i32
    %1 = arith.extui %0 : i1 to i32
    %c0_i32_0 = arith.constant 0 : i32
    %2 = arith.cmpi ne, %1, %c0_i32_0 : i32
    scf.if %2 {
      %cst_21 = arith.constant 0.000000e+00 : f32
      %35 = vector.broadcast %cst_21 : f32 to vector<8x128xf32>
      %c0_22 = arith.constant 0 : index
      %c0_23 = arith.constant 0 : index
      %36 = vector.load %arg8[%c0_22, %c0_23] : memref<8x128xf32, #tpu.memory_space<vmem>>, vector<8x128xf32>
      tpu.vector_store %arg8[%c0_22, %c0_23], %35 {strides = array<i32>} : memref<8x128xf32, #tpu.memory_space<vmem>>, vector<8x128xf32>,
      %cst_24 = arith.constant 0.000000e+00 : f32
      %37 = vector.broadcast %cst_24 : f32 to vector<1x8x128xf32>
      %c0_25 = arith.constant 0 : index
      %c0_26 = arith.constant 0 : index
      %c0_27 = arith.constant 0 : index
      %38 = vector.load %arg9[%c0_25, %c0_26, %c0_27] : memref<1x8x128xf32, #tpu.memory_space<vmem>>, vector<1x8x128xf32>
      tpu.vector_store %arg9[%c0_25, %c0_26, %c0_27], %37 {strides = array<i32>} : memref<1x8x128xf32, #tpu.memory_space<vmem>>, vector<1x8x128xf32>,
    } else {
    }
    %c0 = arith.constant 0 : index
    %c0_1 = arith.constant 0 : index
    %3 = vector.load %arg3[%c0, %c0_1] : memref<8x64xf32, #tpu.memory_space<vmem>>, vector<8x64xf32>
    %c0_2 = arith.constant 0 : index
    %c0_3 = arith.constant 0 : index
    %c0_4 = arith.constant 0 : index
    %4 = vector.load %arg4[%c0_2, %c0_3, %c0_4] : memref<1x64x32xbf16, #tpu.memory_space<vmem>>, vector<1x64x32xbf16>
    %5 = vector.shape_cast %4 : vector<1x64x32xbf16> to vector<64x32xbf16>
    %6 = arith.extf %5 : vector<64x32xbf16> to vector<64x32xf32>
    %c0_5 = arith.constant 0 : index
    %c0_6 = arith.constant 0 : index
    %c0_7 = arith.constant 0 : index
    %7 = vector.load %arg5[%c0_5, %c0_6, %c0_7] : memref<1x32x128xbf16, #tpu.memory_space<vmem>>, vector<1x32x128xbf16>
    %8 = vector.shape_cast %7 : vector<1x32x128xbf16> to vector<32x128xbf16>
    %9 = arith.extf %8 : vector<32x128xbf16> to vector<32x128xf32>
    %c0_8 = arith.constant 0 : index
    %c0_9 = arith.constant 0 : index
    %c0_10 = arith.constant 0 : index
    %10 = vector.load %arg6[%c0_8, %c0_9, %c0_10] : memref<1x1x128xf32, #tpu.memory_space<vmem>>, vector<1x1x128xf32>
    %11 = vector.shape_cast %10 : vector<1x1x128xf32> to vector<1x128xf32>
    %cst = arith.constant dense<0.000000e+00> : vector<8x32xf32>
    %12 = tpu.matmul %3, %6, %cst {dimension_numbers = #tpu.dot_dimension_numbers<[1], [0], [0], [1], [0, 0, 1, 1], [], []>} : vector<8x64xf32>, vector<64x32xf32>, vector<8x32xf32> -> vector<8x32xf32>
    %cst_11 = arith.constant dense<0.000000e+00> : vector<8x128xf32>
    %13 = tpu.matmul %12, %9, %cst_11 {dimension_numbers = #tpu.dot_dimension_numbers<[1], [0], [0], [1], [0, 0, 1, 1], [], []>} : vector<8x32xf32>, vector<32x128xf32>, vector<8x128xf32> -> vector<8x128xf32>
    %14 = vector.broadcast %11 : vector<1x128xf32> to vector<8x128xf32>
    %15 = arith.addf %13, %14 : vector<8x128xf32>
    %cst_12 = arith.constant dense<0xFF800000> : vector<8xf32>
    %16 = vector.multi_reduction <maximumf>, %15, %cst_12 [1] : vector<8x128xf32> to vector<8xf32>
    %17 = vector.shape_cast %16 : vector<8xf32> to vector<8x1xf32>
    %18 = vector.broadcast %17 : vector<8x1xf32> to vector<8x128xf32>
    %19 = arith.subf %15, %18 : vector<8x128xf32>
    %20 = math.exp %19 : vector<8x128xf32>
    %cst_13 = arith.constant dense<0.000000e+00> : vector<8xf32>
    %21 = vector.multi_reduction <add>, %20, %cst_13 [1] : vector<8x128xf32> to vector<8xf32>
    %22 = vector.shape_cast %21 : vector<8xf32> to vector<8x1xf32>
    %c0_14 = arith.constant 0 : index
    %c0_15 = arith.constant 0 : index
    %23 = vector.load %arg8[%c0_14, %c0_15] : memref<8x128xf32, #tpu.memory_space<vmem>>, vector<8x128xf32>
    %24 = vector.broadcast %22 : vector<8x1xf32> to vector<8x128xf32>
    %25 = arith.divf %20, %24 : vector<8x128xf32>
    %26 = arith.addf %23, %25 : vector<8x128xf32>
    %c0_16 = arith.constant 0 : index
    %c0_17 = arith.constant 0 : index
    %27 = vector.load %arg8[%c0_16, %c0_17] : memref<8x128xf32, #tpu.memory_space<vmem>>, vector<8x128xf32>
    tpu.vector_store %arg8[%c0_16, %c0_17], %26 {strides = array<i32>} : memref<8x128xf32, #tpu.memory_space<vmem>>, vector<8x128xf32>,
    %c2_i32 = arith.constant 2 : i32
    %28 = arith.cmpi eq, %arg1, %c2_i32 : i32
    %29 = arith.extui %28 : i1 to i32
    %c0_i32_18 = arith.constant 0 : i32
    %30 = arith.cmpi ne, %29, %c0_i32_18 : i32
    scf.if %30 {
      %c0_21 = arith.constant 0 : index
      %c0_22 = arith.constant 0 : index
      %35 = vector.load %arg8[%c0_21, %c0_22] : memref<8x128xf32, #tpu.memory_space<vmem>>, vector<8x128xf32>
      %cst_23 = arith.constant 0.333333343 : f32
      %36 = vector.broadcast %cst_23 : f32 to vector<8x128xf32>
      %37 = arith.mulf %35, %36 : vector<8x128xf32>
      %c0_24 = arith.constant 0 : index
      %c0_25 = arith.constant 0 : index
      %38 = vector.load %arg8[%c0_24, %c0_25] : memref<8x128xf32, #tpu.memory_space<vmem>>, vector<8x128xf32>
      tpu.vector_store %arg8[%c0_24, %c0_25], %37 {strides = array<i32>} : memref<8x128xf32, #tpu.memory_space<vmem>>, vector<8x128xf32>,
    } else {
    }
    %c0_19 = arith.constant 0 : index
    %31 = memref.load %arg2[%c0_19] : memref<1xi32, #tpu.memory_space<smem>>
    %c1_i32 = arith.constant 1 : i32
    %32 = arith.cmpi eq, %31, %c1_i32 : i32
    %33 = arith.extui %32 : i1 to i32
    %c0_i32_20 = arith.constant 0 : i32
    %34 = arith.cmpi ne, %33, %c0_i32_20 : i32
    scf.if %34 {
      %c0_21 = arith.constant 0 : index
      %c0_22 = arith.constant 0 : index
      %35 = vector.load %arg7[%c0_21, %c0_22] : memref<8x128xf32, #tpu.memory_space<vmem>>, vector<8x128xf32>
      %36 = arith.mulf %35, %15 : vector<8x128xf32>
      %37 = vector.shape_cast %36 : vector<8x128xf32> to vector<1x8x128xf32>
      %cst_23 = arith.constant dense<0.000000e+00> : vector<1xf32>
      %38 = vector.multi_reduction <add>, %37, %cst_23 [1, 2] : vector<1x8x128xf32> to vector<1xf32>
      %39 = vector.shape_cast %38 : vector<1xf32> to vector<1x1x1xf32>
      %40 = vector.extract %39[0, 0, 0] : f32 from vector<1x1x1xf32>
      %cst_24 = arith.constant dense<0.000000e+00> : vector<8xf32>
      %41 = vector.multi_reduction <add>, %35, %cst_24 [1] : vector<8x128xf32> to vector<8xf32>
      %42 = vector.shape_cast %41 : vector<8xf32> to vector<8x1xf32>
      %43 = math.log %22 : vector<8x1xf32>
      %44 = arith.addf %17, %43 : vector<8x1xf32>
      %45 = arith.mulf %42, %44 : vector<8x1xf32>
      %46 = vector.shape_cast %45 : vector<8x1xf32> to vector<1x8x1xf32>
      %cst_25 = arith.constant dense<0.000000e+00> : vector<1xf32>
      %47 = vector.multi_reduction <add>, %46, %cst_25 [1, 2] : vector<1x8x1xf32> to vector<1xf32>
      %48 = vector.shape_cast %47 : vector<1xf32> to vector<1x1x1xf32>
      %49 = vector.extract %48[0, 0, 0] : f32 from vector<1x1x1xf32>
      %50 = tpu.iota {dimensions = array<i32: 2>} : vector<1x8x128xi32>
      %c0_26 = arith.constant 0 : index
      %c0_27 = arith.constant 0 : index
      %c0_28 = arith.constant 0 : index
      %51 = vector.load %arg9[%c0_26, %c0_27, %c0_28] : memref<1x8x128xf32, #tpu.memory_space<vmem>>, vector<1x8x128xf32>
      %52 = vector.broadcast %arg1 : i32 to vector<1x8x128xi32>
      %53 = arith.cmpi eq, %50, %52 : vector<1x8x128xi32>
      %54 = arith.subf %49, %40 : f32
      %cst_29 = arith.constant 0.000000e+00 : f32
      %55 = vector.broadcast %54 : f32 to vector<1x8x128xf32>
      %56 = vector.broadcast %cst_29 : f32 to vector<1x8x128xf32>
      %57 = arith.select %53, %55, %56 : vector<1x8x128xi1>, vector<1x8x128xf32>
      %58 = arith.addf %51, %57 : vector<1x8x128xf32>
      %c0_30 = arith.constant 0 : index
      %c0_31 = arith.constant 0 : index
      %c0_32 = arith.constant 0 : index
      %59 = vector.load %arg9[%c0_30, %c0_31, %c0_32] : memref<1x8x128xf32, #tpu.memory_space<vmem>>, vector<1x8x128xf32>
      tpu.vector_store %arg9[%c0_30, %c0_31, %c0_32], %58 {strides = array<i32>} : memref<1x8x128xf32, #tpu.memory_space<vmem>>, vector<1x8x128xf32>,
    } else {
    }
    return
  }
  func.func @transform_0(%arg0: i32, %arg1: i32, %arg2: memref<1xi32, #tpu.memory_space<smem>>) -> (i32, i32) {
    %c0_i32 = arith.constant 0 : i32
    %c0_i32_0 = arith.constant 0 : i32
    return %arg0, %c0_i32 : i32, i32
  }
  func.func @transform_1(%arg0: i32, %arg1: i32, %arg2: memref<1xi32, #tpu.memory_space<smem>>) -> (i32, i32, i32) {
    %c0_i32 = arith.constant 0 : i32
    %c0_i32_0 = arith.constant 0 : i32
    %c0_i32_1 = arith.constant 0 : i32
    return %arg1, %c0_i32, %c0_i32_0 : i32, i32, i32
  }
  func.func @transform_2(%arg0: i32, %arg1: i32, %arg2: memref<1xi32, #tpu.memory_space<smem>>) -> (i32, i32, i32) {
    %c0_i32 = arith.constant 0 : i32
    %c0_i32_0 = arith.constant 0 : i32
    %c0_i32_1 = arith.constant 0 : i32
    return %arg1, %c0_i32, %c0_i32_0 : i32, i32, i32
  }
  func.func @transform_3(%arg0: i32, %arg1: i32, %arg2: memref<1xi32, #tpu.memory_space<smem>>) -> (i32, i32, i32) {
    %c0_i32 = arith.constant 0 : i32
    %c0_i32_0 = arith.constant 0 : i32
    %c0_i32_1 = arith.constant 0 : i32
    return %arg1, %c0_i32, %c0_i32_0 : i32, i32, i32
  }
  func.func @transform_4(%arg0: i32, %arg1: i32, %arg2: memref<1xi32, #tpu.memory_space<smem>>) -> (i32, i32) {
    %c0_i32 = arith.constant 0 : i32
    %c0_i32_0 = arith.constant 0 : i32
    return %arg0, %c0_i32 : i32, i32
  }
  func.func @transform_5(%arg0: i32, %arg1: i32, %arg2: memref<1xi32, #tpu.memory_space<smem>>) -> (i32, i32) {
    %c0_i32 = arith.constant 0 : i32
    %c0_i32_0 = arith.constant 0 : i32
    return %arg0, %c0_i32 : i32, i32
  }
  func.func @transform_6(%arg0: i32, %arg1: i32, %arg2: memref<1xi32, #tpu.memory_space<smem>>) -> (i32, i32, i32) {
    %c0_i32 = arith.constant 0 : i32
    %c0_i32_0 = arith.constant 0 : i32
    %c0_i32_1 = arith.constant 0 : i32
    return %arg0, %c0_i32, %c0_i32_0 : i32, i32, i32
  }
}

</mosaic_0001>

<bundles_post_ra>
// kernel: tpu_custom_call.1
= control target key start
LH: loop header
LB: loop body
LE: loop exit
PB: predicated region body
PF: predicated region fallthrough
CT: control target
= control target key end

     0   :  { %s946_s0 = inlined_call_operand.<no memory space> [shape: s32[1], index: 0, kind: input, shape index: {}]   ;;  %s947_s1 = inlined_call_operand.vmem [shape: f32[8,64], index: 1, kind: input, shape index: {}]   ;;  %s948_s2 = inlined_call_operand.vmem [shape: bf16[3,64,32], index: 2, kind: input, shape index: {}]   ;;  %s949_s3 = inlined_call_operand.vmem [shape: bf16[3,32,128], index: 3, kind: input, shape index: {}]   ;;  %s950_s4 = inlined_call_operand.vmem [shape: f32[3,1,128], index: 4, kind: input, shape index: {}]   ;;  %s951_s5 = inlined_call_operand.vmem [shape: f32[8,128], index: 5, kind: input, shape index: {}]   ;;  %s952_s6 = inlined_call_operand.hbm [shape: f32[8,128], index: 6, kind: output, shape index: {0}]   ;;  %s953_s7 = inlined_call_operand.hbm [shape: f32[1,8,128], index: 7, kind: output, shape index: {1}]  }
   0x1   :  { %13 = sst [smem:[#allocation3]] %s946_s0 }
   0x2   :  { %14 = vsyncpa [#allocation5], 0 }
   0x3   :  { %15 = vsyncpa [#allocation7], 0  ;;  %s862_s26 = smov 0   ;;  %s864_s27 = smov 0  }
   0x4   :  { %s866_s28 = smov 0  }
   0x5 LB: > { %s627_s0 = sadd.s32 4294967295, %s814_s28   ;;  %s30_s29 = sadd.s32 1, %s810_s27  ;;  %s814_s28 = sphi %s866_s28, %s21_s28   ;;  %s810_s27 = sphi %s864_s27, %s956_s27   ;;  %s806_s26 = sphi %s862_s26, %s955_s26  }
   0x6   : > { %p31_p0 = scmp.ge.s32.totalorder %s30_s29, 3  ;;  %p632_p1 = scmp.ge.s32.totalorder %s814_s28, 1 }
   0x7   : > { %p267_p2 = scmp.lt.s32.totalorder %s814_s28, 4 }
   0x8   : > { %s958_s29 = smov (%p31_p0, %s30_s29), 0 }
   0x9   : > { %p268_p3 = pnand %p632_p1, %p267_p2 }
   0xa   : > { %p312_p4 = scmp.lt.s32.totalorder (!%p268_p3), %s806_s26, 2  ;;  %p637_p5 = scmp.ne.s32.totalorder (!%p268_p3), %s806_s26, 0 }
   0xb   : > { %271 = sbr.rel (%p268_p3) target bundleno = 900 (0x384), region = 40 }
  0x10   : > { %s885_s30 = scalar_select %p312_p4, %s806_s26, 2 }
  0x11   : > { %332 = sbr.rel (%p637_p5) target bundleno = 25 (0x19), region = 44 }
  0x12   : > { %s648_s8 = sshll.u32 %s885_s30, 5  ;;  %s649_s9 = sshll.u32 %s885_s30, 4 }
  0x13   : > { %s316_s12 = scalar_lea.vmem %s948_s2, %s648_s8  ;;  %s321_s15 = scalar_lea.vmem %s949_s3, %s649_s9 }
  0x14   : > { %s324_s18 = scalar_lea.vmem %s950_s4, %s885_s30 }
  0x16   : > { %v816_v0 = vmov 0.0  }
  0x17   : > { %333 = vst [vmem:[#allocation4] sm:$0xff] %v816_v0 }
  0x18   : > { %334 = vst [vmem:[#allocation6] sm:$0xff] %v816_v0 }
  0x19 PF: > { %v676_v1 = vld [vmem:[%s316_s12 + $0x18] sm:$0xff]   ;;  %v675_v2 = vld [vmem:[%s316_s12 + $0x10] sm:$0xff]   ;;  %v677_v5 = vld [vmem:[%s321_s15 + $0x8] sm:$0xff]   ;;  %vm361_vm0 = vcmask 523264   ;;  %vm388_vm1 = vcmask 261120   ;;  %p640_p6 = scmp.ne.s32.totalorder %s806_s26, 2 }
  0x1a   : > { %v665_v3 = vunpack.c.h.bf16 %v676_v1  ;;  %v664_v4 = vunpack.c.l.bf16 %v676_v1  ;;  %v667_v6 = vld [vmem:[%s321_s15] sm:$0xff]   ;;  %v661_v7 = vunpack.c.h.bf16 %v675_v2  ;;  %v673_v8 = vunpack.c.h.bf16 %v677_v5  ;;  %v674_v10 = vld [vmem:[%s316_s12 + $0x8] sm:$0xff]  }
  0x1b   : > { %v672_v9 = vunpack.c.l.bf16 %v677_v5  ;;  %v660_v11 = vunpack.c.l.bf16 %v675_v2  ;;  %v669_v12 = vunpack.c.h.bf16 %v667_v6  ;;  %v657_v13 = vunpack.c.h.bf16 %v674_v10  ;;  %v651_v14 = vld [vmem:[%s316_s12] sm:$0xff]  }
  0x1c   : > { %373 = vmatpush.msra.mxu0 %v665_v3  ;;  %404 = vmatpush.msra.mxu1 %v673_v8  ;;  %v656_v15 = vunpack.c.l.bf16 %v674_v10  ;;  %v653_v16 = vunpack.c.h.bf16 %v651_v14  ;;  %v652_v17 = vunpack.c.l.bf16 %v651_v14  ;;  %v335_v18 = vld [vmem:[%s947_s1] sm:$0xff]  ;;  %v668_v19 = vunpack.c.l.bf16 %v667_v6 }
  0x1d   : > { %v721_v21 = vld [vmem:[%s324_s18] ss:$0 sm:$0xff] }
  0x1e   : > { %374 = vmatpush.msra.mxu0 %v664_v4  ;;  %405 = vmatpush.msra.mxu1 %v672_v9  ;;  %v419_v38 = vld [vmem:[#allocation4] sm:$0xff] }
  0x20   : > { %375 = vmatpush.msra.mxu0 %v661_v7  ;;  %406 = vmatpush.msra.mxu1 %v669_v12 }
  0x22   : > { %376 = vmatpush.msra.mxu0 %v660_v11  ;;  %407 = vmatpush.msra.mxu1 %v668_v19 }
  0x24   : > { %377 = vmatpush.msra.mxu0 %v657_v13 }
  0x26   : > { %378 = vmatpush.msra.mxu0 %v656_v15 }
  0x28   : > { %379 = vmatpush.msra.mxu0 %v653_v16 }
  0x2a   : > { %380 = vmatpush.msra.mxu0 %v652_v17 }
  0x2b   : > { %638 = vmatmul.msk.f32.vlgmr.msra.gmra.mxu0 %vm361_vm0, %v335_v18 }
  0xa8   : > { %v382_v20 = vpop.f32.mrf.mxu0 }
  0xa9   : > { %639 = vmatmul.msk.f32.vlgmr.msra.gmra.mxu1 %vm388_vm1, %v382_v20 }
 0x126   : > { %v409_v22 = vpop.f32.mrf.mxu1 }
 0x127   : > { %v410_v23 = vadd.f32 %v721_v21, %v409_v22 }
 0x129   : > { %412 = vmax.xlane.f32.xlu0 %v410_v23 }
 0x19c   : > { %v413_v24 = vpop.xlane.xlu0 %412 }
 0x19d   : > { %v414_v25 = vsub.f32 %v410_v23, %v413_v24 }
 0x19f   : > { %v415_v26 = vmul.f32 1.442695, %v414_v25 }
 0x1a1   : > { %722 = vpow2.f32 %v415_v26 }
 0x1a7   : > { %v723_v27 = vpop.eup %722 }
 0x1a8   : > { %417 = vadd.xlane.f32.xlu0 %v723_v27 }
 0x21b   : > { %v418_v28 = vpop.xlane.xlu0 %417 }
 0x21c   : > { %724 = vrcp.f32 %v418_v28  ;;  %v431_v32 = vand.u32 2147483648, %v418_v28  ;;  %v429_v34 = vand.u32 2147483647, %v418_v28  ;;  %vm425_vm3 = vweird.f32 %v418_v28 }
 0x21e   : > { %v432_v36 = vor.u32 1.1754944e-38, %v431_v32  ;;  %vm430_vm5 = vcmp.eq.f32.partialorder %v429_v34, 8.507059e+37 }
 0x222   : > { %v725_v29 = vpop.eup %724 }
 0x223   : > { %v421_v30 = vmul.f32 %v725_v29, %v418_v28  ;;  %vm426_vm2 = vweird.f32 %v725_v29 }
 0x224   : > { %vm427_vm4 = vmor %vm425_vm3, %vm426_vm2 }
 0x225   : > { %v422_v31 = vsub.f32 1.0, %v421_v30 }
 0x227   : > { %v423_v33 = vmul.f32 %v725_v29, %v422_v31 }
 0x229   : > { %v424_v35 = vadd.f32 %v725_v29, %v423_v33 }
 0x22b   : > { %v428_v37 = vsel %vm427_vm4, %v725_v29, %v424_v35 }
 0x22c   : > { %v433_v39 = vsel %vm430_vm5, %v432_v36, %v428_v37 }
 0x22d   : > { %v434_v40 = vmul.f32 %v723_v27, %v433_v39  ;;  %440 = sbr.rel (%p640_p6) target bundleno = 572 (0x23c), region = 48 }
 0x22f   : > { %v435_v41 = vadd.f32 %v434_v40, %v419_v38 }
 0x231   : > { %436 = vst [vmem:[#allocation4] sm:$0xff] %v435_v41 }
 0x238   : > { %v441_v42 = vld [vmem:[#allocation4] sm:$0xff] }
 0x239   : > { %v442_v43 = vmul.f32 0.33333334, %v441_v42 }
 0x23b   : > { %443 = vst [vmem:[#allocation4] sm:$0xff] %v442_v43 }
 0x23c PF: > { %s444_s23 = sld [smem:[#allocation3]] }
 0x242   : > { %p641_p7 = scmp.ne.s32.totalorder %s444_s23, 1 }
 0x244   : > { %448 = sbr.rel (%p641_p7) target bundleno = 890 (0x37a), region = 52 }
 0x249   : > { %v449_v44 = vld [vmem:[%s951_s5] sm:$0xff]  ;;  %726 = vlog2.f32 %v418_v28  ;;  %vm466_vm6 = vcmask 7168   ;;  %v477_v2 = vlaneseq  ;;  %v480_v4 = vstv %s806_s26  ;;  %v479_v5 = vld [vmem:[#allocation6] sm:$0xff] }
 0x24a   : > { %460 = vadd.xlane.f32.xlu0 %v449_v44  ;;  %v450_v45 = vmul.f32 %v449_v44, %v410_v23 }
 0x24b   : > { %v478_v3 = vand.u32 127, %v477_v2 }
 0x24d   : > { %vm481_vm7 = vcmp.eq.s32.totalorder %v478_v3, %v480_v4 }
 0x24f   : > { %v727_v46 = vpop.eup %726 }
 0x250   : > { %v463_v47 = vmul.f32 0.6931472, %v727_v46 }
 0x252   : > { %451 = vadd.xlane.f32.xlu0 %v450_v45  ;;  %v464_v48 = vadd.f32 %v463_v47, %v413_v24 }
 0x2bd   : > { %v461_v49 = vpop.xlane.xlu0 %460 }
 0x2be   : > { %v465_v50 = vmul.f32 %v464_v48, %v461_v49 }
 0x2c0   : > { %v467_v51 = vsel %vm466_vm6, %v465_v50, 0.0 }
 0x2c1   : > { %468 = vadd.xlane.f32.xlu1 %v467_v51 }
 0x2c5   : > { %v452_v52 = vpop.xlane.xlu0 %451 }
 0x2c6   : > { %v453_v53 = vrot.slane %v452_v52, 4 }
 0x2c8   : > { %v454_v54 = vadd.f32 %v453_v53, %v452_v52 }
 0x2ca   : > { %v455_v55 = vrot.slane %v454_v54, 2 }
 0x2cc   : > { %v456_v56 = vadd.f32 %v455_v55, %v454_v54 }
 0x2ce   : > { %v457_v57 = vrot.slane %v456_v56, 1 }
 0x2d0   : > { %v458_v58 = vadd.f32 %v457_v57, %v456_v56 }
 0x2d2   : > { %678 = vpush %v458_v58 }
 0x303   : > { %s679_s30 = spop %678 }
 0x334   : > { %v469_v59 = vpop.xlane.xlu1 %468 }
 0x335   : > { %v470_v60 = vrot.slane %v469_v59, 4 }
 0x337   : > { %v471_v61 = vadd.f32 %v470_v60, %v469_v59 }
 0x339   : > { %v472_v62 = vrot.slane %v471_v61, 2 }
 0x33b   : > { %v473_v63 = vadd.f32 %v472_v62, %v471_v61 }
 0x33d   : > { %v474_v0 = vrot.slane %v473_v63, 1 }
 0x33f   : > { %v475_v1 = vadd.f32 %v474_v0, %v473_v63 }
 0x341   : > { %680 = vpush %v475_v1 }
 0x372   : > { %s681_s8 = spop %680 }
 0x373   : > { %s482_s9 = ssub.f32 %s681_s8, %s679_s30 }
 0x375   : > { %v483_v6 = vstv %s482_s9 }
 0x376   : > { %v484_v7 = vsel %vm481_vm7, %v483_v6, 0.0 }
 0x377   : > { %v485_v8 = vadd.f32 %v484_v7, %v479_v5 }
 0x379   : > { %486 = vst [vmem:[#allocation6] sm:$0xff] %v485_v8 }
 0x37a PF: > { %p915_p8 = scmp.eq.s32.totalorder %s627_s0, 2  ;;  %s497_s26 = sshll.u32 %s952_s6, 4  ;;  %s498_s26 = int_to_ptr.hbm [resolvable:$true] %s497_s26 }
 0x37b   : > { %s817_s13 = smov [#allocation4]   ;;  %s818_s15 = smov [#allocation6]  }
 0x37c   : > { %s495_s14 = sshll.u32 %s817_s13, 4  ;;  %s509_s16 = sshll.u32 %s818_s15, 4  ;;  %s496_s14 = int_to_ptr.vmem [resolvable:$true] %s495_s14  ;;  %s510_s16 = int_to_ptr.vmem [resolvable:$true] %s509_s16 }
 0x37d   : > { %683 = dma.vmem_to_hbm [thread:$0]  (%p915_p8), %s496_s14, 128, %s498_s26, [#allocation5]  }
 0x37e   : > { %s511_s18 = sshll.u32 %s953_s7, 4  ;;  %s512_s18 = int_to_ptr.hbm [resolvable:$true] %s511_s18 }
 0x37f   : > { %685 = dma.vmem_to_hbm [thread:$0]  (%p915_p8), %s510_s16, 128, %s512_s18, [#allocation7]  }
 0x380   : > { %797 = dma.done.wait (%p915_p8), [#allocation5], 128  }
 0x381   : > { %799 = vsyncadd (%p915_p8), [#allocation5], 4294967168 }
 0x382   : > { %801 = dma.done.wait (%p915_p8), [#allocation7], 128  }
 0x383   : > { %803 = vsyncadd (%p915_p8), [#allocation7], 4294967168 }
 0x384 PF: > { %s21_s28 = sadd.s32 1, %s814_s28   ;;  %s955_s26 = smov %s810_s27 }
 0x385   : > { %p18_p9 = scmp.ge.s32.totalorder %s21_s28, 5   ;;  %s956_s27 = smov %s958_s29 }
 0x387   :  { %20 = sbr.rel (!%p18_p9) target bundleno = 5 (0x5), region = 101 }
 0x38c   :  { %530 = vsyncpa [#allocation5], 1 }
 0x38d   :  { %532 = vsyncpa [#allocation5 + $0x1], 1 }
 0x38e   :  { %533 = vsyncpa [#allocation7], 1 }

</bundles_post_ra>
